<compile_context>
chip_gen: v5e
topology: v5e:2x2
jax: 0.10.0
libtpu: 0.0.40
codegen_flags: <defaults>
</compile_context>

<pallas_src>
import jax
import jax.numpy as jnp
from jax import lax
from jax.experimental import pallas as pl
from jax.experimental.pallas import tpu as pltpu


_TB_MAX = 16384                      # batch-tile cap (v7x 64 MiB VMEM ceiling)
_VMEM_BUDGET = 36 * 1024 * 1024      # target for double-buffered tiles
_VMEM_LIMIT = 48 * 1024 * 1024       # scoped-VMEM limit (< v7x 64 MiB physical)

_COMPILER_PARAMS = pltpu.CompilerParams(
    # Batch axis is embarrassingly parallel -> shards grid steps across the
    # 2 TensorCores on v7x; harmless no-op on v5e/v6e (1 TC).
    dimension_semantics=("parallel",),
    # v5e's scoped-VMEM default is only 16 MiB; raise it so large batch tiles
    # (the main perf lever for this memory-bound op) are accepted everywhere.
    vmem_limit_bytes=_VMEM_LIMIT,
)


def _ls_kernel_c1(x_ref, w_ref, b_ref, o_ref):
    # C == 1 GEMV tile: a 128/256-wide MXU would be <1% utilized for a
    # 1-column result, so stay on the VPU (multiply) + XLU (lane reduction).
    # Compute sits far below the HBM roofline on every chip generation.
    x = x_ref[...]                       # (tb, F) f32
    w = w_ref[...]                       # (1, F)  f32, broadcast over rows
    b = b_ref[0, 0]                      # scalar bias from SMEM
    y = jnp.sum(x * w, axis=-1, keepdims=True) + b
    o_ref[...] = y.astype(o_ref.dtype)


def _ls_kernel_general(x_ref, w_ref, b_ref, o_ref):
    # C > 1 fallback (no reference dataset hits this): MXU matmul contracting
    # on the feature axis of the *untransposed* (C, F) weight, so the wrapper
    # never materializes weight.T in HBM (saves a read+write of the weight).
    # NOTE: for C < 128 the (tb, C) output block is still lane-padded /
    # masked-store, the same trade-off accepted on the C == 1 path.
    y = lax.dot_general(
        x_ref[...], w_ref[...],
        dimension_numbers=(((1,), (1,)), ((), ())),
        preferred_element_type=jnp.float32)
    o_ref[...] = (y + b_ref[...]).astype(o_ref.dtype)


def _batch_tiling(batch, per_row_bytes, fixed_bytes):
    """Pick (tile_rows, num_tiles) for the batch axis.

    per_row_bytes / fixed_bytes are the double-buffered VMEM costs per batch
    row and per kernel (resident weight etc.).
    """
    fit_rows = (_VMEM_BUDGET - fixed_bytes) // per_row_bytes
    fit_rows = max(8, (fit_rows // 8) * 8)
    tb_cap = min(fit_rows, _TB_MAX)
    if batch <= tb_cap:
        # Single full-extent block: one DMA of x / weight, no pipeline
        # machinery, no partial tile (exempt from the (8,128) rule because the
        # block equals the full array dims).
        return batch, 1
    n_tiles = pl.cdiv(batch, tb_cap)
    if n_tiles % 2:
        # Keep the grid length even so v7x's two TensorCores split the
        # "parallel" batch axis evenly (irrelevant on v5e/v6e).
        n_tiles += 1
    tb = ((pl.cdiv(batch, n_tiles) + 7) // 8) * 8    # sublane-aligned tile
    return tb, pl.cdiv(batch, tb)


def least_square_forward(x, weight, bias):
    """Forward of fedtorch Least_square: y = x @ weight.T + bias.

    x: (B, F) f32, weight: (C, F) f32, bias: (C,) f32  ->  (B, C) f32.
    """
    # TODO(synk): the 'url' dataset (F ~= 3.2e6) would need a feature-axis
    # reduction grid as well -- a single row's features no longer fit a VMEM
    # tile.  Not implemented here (MSD / epsilon / rcv1 are covered).
    B, F = x.shape
    C, _ = weight.shape

    if C == 1:
        # Double-buffered per-row cost: x tile + 128-lane-padded (tb, 1)
        # output block.  Keeping tb inside this budget (rather than staging a
        # lane-dense output) keeps masked stores / VMEM padding bounded while
        # staying under the HBM roofline on all chips.
        per_row = 2 * 4 * F + 2 * 4 * 128
        fixed = 2 * 4 * F                          # resident (1, F) weight
        tb, n_tiles = _batch_tiling(B, per_row, fixed)

        bias_smem = bias.reshape(1, 1).astype(jnp.float32)
        return pl.pallas_call(
            _ls_kernel_c1,
            out_shape=jax.ShapeDtypeStruct((B, 1), jnp.float32),
            grid=(n_tiles,),
            in_specs=[
                pl.BlockSpec((tb, F), lambda i: (i, 0)),            # x tile
                pl.BlockSpec((1, F), lambda i: (0, 0)),             # weight
                pl.BlockSpec(memory_space=pltpu.MemorySpace.SMEM),  # bias
            ],
            out_specs=pl.BlockSpec((tb, 1), lambda i: (i, 0)),
            compiler_params=_COMPILER_PARAMS,
        )(x, weight, bias_smem)

    # C > 1 fallback (unused by the reference datasets).
    out_lanes = max(C, 128)
    per_row = 2 * 4 * F + 2 * 4 * out_lanes
    fixed = 2 * 4 * C * F + 2 * 4 * out_lanes      # resident weight + bias
    tb, n_tiles = _batch_tiling(B, per_row, fixed)

    bias2d = bias.reshape(1, C).astype(jnp.float32)
    return pl.pallas_call(
        _ls_kernel_general,
        out_shape=jax.ShapeDtypeStruct((B, C), jnp.float32),
        grid=(n_tiles,),
        in_specs=[
            pl.BlockSpec((tb, F), lambda i: (i, 0)),
            pl.BlockSpec((C, F), lambda i: (0, 0)),
            pl.BlockSpec((1, C), lambda i: (0, 0)),
        ],
        out_specs=pl.BlockSpec((tb, C), lambda i: (i, 0)),
        compiler_params=_COMPILER_PARAMS,
    )(x, weight, bias2d)


def init_least_square_params(key, num_features, num_classes):
    """Mimic PyTorch nn.Linear default init (uniform +-1/sqrt(fan_in))."""
    kw, kb = jax.random.split(key)
    bound = 1.0 / jnp.sqrt(jnp.float32(num_features))
    weight = jax.random.uniform(
        kw, (num_classes, num_features), jnp.float32, -bound, bound)
    bias = jax.random.uniform(
        kb, (num_classes,), jnp.float32, -bound, bound)
    return weight, bias


if __name__ == "__main__":
    # Dataset 'MSD': num_features=90, num_classes=1.
    NUM_FEATURES = 90
    NUM_CLASSES = 1

    key = jax.random.PRNGKey(0)
    kx1, kx2, kx3, kp = jax.random.split(key, 4)
    weight, bias = init_least_square_params(kp, NUM_FEATURES, NUM_CLASSES)

    def check(xb):
        out = jax.block_until_ready(least_square_forward(xb, weight, bias))
        ref = xb @ weight.T + bias
        assert out.shape == ref.shape
        assert jnp.allclose(out, ref, atol=1e-4, rtol=1e-4), float(
            jnp.max(jnp.abs(out - ref)))

    # Small batch -> single full-extent block.
    check(jax.random.normal(kx1, (8, NUM_FEATURES), jnp.float32))
    # Medium batch (previously 3 grid steps + partial tile) -> now one block.
    check(jax.random.normal(kx2, (4100, NUM_FEATURES), jnp.float32))
    # Large batch -> tiled grid: even number of tiles (v7x), partial last tile.
    check(jax.random.normal(kx3, (33000, NUM_FEATURES), jnp.float32))

    print("KERNEL_OK")
</pallas_src>

<mosaic_0001>
module attributes {stable_mosaic.version = 11 : i64} {
  func.func @_ls_kernel_c1(%arg0: i32, %arg1: memref<8x90xf32, #tpu.memory_space<vmem>>, %arg2: memref<1x90xf32, #tpu.memory_space<vmem>>, %arg3: memref<1x1xf32, #tpu.memory_space<smem>>, %arg4: memref<8x1xf32, #tpu.memory_space<vmem>>) attributes {dimension_semantics = [#tpu.dimension_semantics<parallel>], iteration_bounds = array<i64: 1>, scalar_prefetch = 0 : i64, scratch_operands = 0 : i64, tpu.core_type = #tpu.core_type<tc>, window_params = [{transform_indices = @transform_0, window_bounds = array<i64: 8, 90>}, {pipeline_mode = #tpu.pipeline_mode<synchronous>, transform_indices = @transform_1, window_bounds = array<i64: 1, 90>}, {transform_indices = @transform_2, window_bounds = array<i64: 1, 1>}, {transform_indices = @transform_3, window_bounds = array<i64: 8, 1>}]} {
    %c0 = arith.constant 0 : index
    %c0_0 = arith.constant 0 : index
    %0 = vector.load %arg1[%c0, %c0_0] : memref<8x90xf32, #tpu.memory_space<vmem>>, vector<8x90xf32>
    %c0_1 = arith.constant 0 : index
    %c0_2 = arith.constant 0 : index
    %1 = vector.load %arg2[%c0_1, %c0_2] : memref<1x90xf32, #tpu.memory_space<vmem>>, vector<1x90xf32>
    %c0_3 = arith.constant 0 : index
    %c0_4 = arith.constant 0 : index
    %2 = memref.load %arg3[%c0_3, %c0_4] : memref<1x1xf32, #tpu.memory_space<smem>>
    %3 = vector.broadcast %1 : vector<1x90xf32> to vector<8x90xf32>
    %4 = arith.mulf %0, %3 : vector<8x90xf32>
    %cst = arith.constant dense<0.000000e+00> : vector<8xf32>
    %5 = vector.multi_reduction <add>, %4, %cst [1] : vector<8x90xf32> to vector<8xf32>
    %6 = vector.shape_cast %5 : vector<8xf32> to vector<8x1xf32>
    %7 = vector.broadcast %2 : f32 to vector<8x1xf32>
    %8 = arith.addf %6, %7 : vector<8x1xf32>
    %c0_5 = arith.constant 0 : index
    %c0_6 = arith.constant 0 : index
    %9 = vector.load %arg4[%c0_5, %c0_6] : memref<8x1xf32, #tpu.memory_space<vmem>>, vector<8x1xf32>
    tpu.vector_store %arg4[%c0_5, %c0_6], %8 {strides = array<i32>} : memref<8x1xf32, #tpu.memory_space<vmem>>, vector<8x1xf32>,
    return
  }
  func.func @transform_0(%arg0: i32) -> (i32, i32) {
    %c0_i32 = arith.constant 0 : i32
    %c0_i32_0 = arith.constant 0 : i32
    return %arg0, %c0_i32 : i32, i32
  }
  func.func @transform_1(%arg0: i32) -> (i32, i32) {
    %c0_i32 = arith.constant 0 : i32
    %c0_i32_0 = arith.constant 0 : i32
    %c0_i32_1 = arith.constant 0 : i32
    return %c0_i32, %c0_i32_0 : i32, i32
  }
  func.func @transform_2(%arg0: i32) -> (i32, i32) {
    %c0_i32 = arith.constant 0 : i32
    %c0_i32_0 = arith.constant 0 : i32
    %c0_i32_1 = arith.constant 0 : i32
    return %c0_i32, %c0_i32_0 : i32, i32
  }
  func.func @transform_3(%arg0: i32) -> (i32, i32) {
    %c0_i32 = arith.constant 0 : i32
    %c0_i32_0 = arith.constant 0 : i32
    return %arg0, %c0_i32 : i32, i32
  }
}

</mosaic_0001>

<bundles_post_ra>
// kernel: tpu_custom_call.1
= control target key start
LH: loop header
LB: loop body
LE: loop exit
PB: predicated region body
PF: predicated region fallthrough
CT: control target
= control target key end

     0   :  { %9 = vsyncpa [#allocation4], 0  ;;  %s77_s15 = smov [#allocation3]   ;;  %s110_s0 = inlined_call_operand.hbm [shape: f32[8,90], index: 0, kind: input, shape index: {}]   ;;  %s111_s1 = inlined_call_operand.vmem [shape: f32[1,90], index: 1, kind: input, shape index: {}]   ;;  %s112_s2 = inlined_call_operand.<no memory space> [shape: f32[1,1], index: 2, kind: input, shape index: {}]   ;;  %s113_s3 = inlined_call_operand.vmem [shape: f32[8,1], index: 3, kind: output, shape index: {}]  }
   0x1   :  { %s15_s14 = sshll.u32 %s110_s0, 4  ;;  %s17_s16 = sshll.u32 %s77_s15, 4  ;;  %s16_s14 = int_to_ptr.hbm [resolvable:$true] %s15_s14  ;;  %s18_s16 = int_to_ptr.vmem [resolvable:$true] %s17_s16 }
   0x2   :  { %20 = dma.hbm_to_vmem [thread:$0]  %s16_s14, 128, %s18_s16, [#allocation4]  }
   0x3   :  { %75 = dma.done.wait [#allocation4], 128  }
   0x4   :  { %76 = vsyncadd [#allocation4], 4294967168  ;;  %v29_v0 = vld [vmem:[#allocation3] sm:$0xff]  ;;  %vm36_vm0 = vcmask 736256   ;;  %v40_v4 = vstv %s112_s2  ;;  %vm42_vm1 = vcmask 7168  }
   0x5   :  { %v50_v1 = vld [vmem:[%s111_s1] ss:$0 sm:$0xff] }
   0x6   :  { %v35_v2 = vmul.f32 %v50_v1, %v29_v0 }
   0x8   :  { %v37_v3 = vsel %vm36_vm0, %v35_v2, 0.0 }
   0x9   :  { %38 = vadd.xlane.f32.xlu0 %v37_v3 }
  0x7c   :  { %v39_v5 = vpop.xlane.xlu0 %38 }
  0x7d   :  { %v41_v6 = vadd.f32 %v40_v4, %v39_v5 }
  0x7f   :  { %43 = vst.msk [vmem:[%s113_s3] sm:$0xff] %vm42_vm1, %v41_v6 }
  0x80   :  { %48 = vsyncpa [#allocation4], 1 }

</bundles_post_ra>
